<compile_context>
chip_gen: v6e
topology: v6e:2x2x1
jax: 0.10.0
libtpu: 0.0.40
codegen_flags: <defaults>
</compile_context>

<pallas_src>
import numpy as np
import jax
import jax.numpy as jnp
from jax import lax
from jax.experimental import pallas as pl
from jax.experimental.pallas import tpu as pltpu

# ---------------------------------------------------------------------------
# Hardcoded pywt low-pass decomposition filters (Wavelet(name).dec_lo).
# sym2 == db2 and sym3 == db3 (identical filters).
# ---------------------------------------------------------------------------
_DB1 = [0.7071067811865476, 0.7071067811865476]
_DB2 = [-0.12940952255092145, 0.22414386804185735,
        0.836516303737469, 0.48296291314469025]
_DB3 = [0.035226291882100656, -0.08544127388224149, -0.13501102001039084,
        0.4598775021193313, 0.8068915093133388, 0.3326705529509569]
_DB4 = [-0.010597401784997278, 0.032883011666982945, 0.030841381835986965,
        -0.18703481171888114, -0.02798376941698385, 0.6308807679295904,
        0.7148465705525415, 0.23037781330885523]
_SYM4 = [-0.07576571478927333, -0.02963552764599851, 0.49761866763201545,
         0.8037387518059161, 0.29785779560527736, -0.09921954357684722,
         -0.012603967262037833, 0.0322231006040427]

# (name, F, dec_lo)  -- same order as DWTFeat.__init__
WAVELETS = [
    ("db1", 2, _DB1), ("db2", 4, _DB2), ("db3", 6, _DB3), ("db4", 8, _DB4),
    ("sym2", 4, _DB2), ("sym3", 6, _DB3), ("sym4", 8, _SYM4),
]
NW = len(WAVELETS)
SEG = 128        # per-wavelet lane segment in the fused operator / matmul output
NSTAT = 4        # max, min, mean, std


# ---------------------------------------------------------------------------
# Linear-operator construction (parameter setup, plain numpy / float64).
# Matches pywt dwt/idwt with mode='symmetric' and pywt.waverec trimming rules.
# ---------------------------------------------------------------------------
def dwt_lo_matrix(n, dec_lo):
    """Matrix of the low-pass analysis step: x (n,) -> cA ((n+p-1)//2,)."""
    p = len(dec_lo)
    eye = np.eye(n, dtype=np.float64)
    ext = np.pad(eye, ((p - 1, p - 1), (0, 0)), mode="symmetric")
    n_conv = n + p - 1
    conv = np.zeros((n_conv, n), dtype=np.float64)
    for t in range(n_conv):
        for k in range(p):
            conv[t] += dec_lo[k] * ext[t + p - 1 - k]
    return conv[1::2]  # downsample (pywt convention)


def idwt_lo_matrix(nc, rec_lo):
    """Matrix of the low-pass synthesis step (zero details): cA (nc,) -> rec (2*nc-p+2,)."""
    p = len(rec_lo)
    up_len = 2 * nc - 1
    up = np.zeros((up_len, nc), dtype=np.float64)
    up[np.arange(0, up_len, 2), np.arange(nc)] = 1.0
    full_len = up_len + p - 1
    full = np.zeros((full_len, nc), dtype=np.float64)
    for t in range(full_len):
        for k in range(p):
            j = t - k
            if 0 <= j < up_len:
                full[t] += rec_lo[k] * up[j]
    out_len = 2 * nc - p + 2
    return full[p - 2: p - 2 + out_len]


def build_approx_operator(L, dec_lo, F):
    """Dense (L_out, L) operator: wavedec(level M) -> zero details -> waverec."""
    dec_lo = np.asarray(dec_lo, dtype=np.float64)
    rec_lo = dec_lo[::-1]
    M = int(np.log(L / (F - 1)) / np.log(2))  # exactly as DWT() computes it
    assert M >= 1, "example length too short for this wavelet/F"
    lens = [L]
    A = np.eye(L, dtype=np.float64)
    for _ in range(M):
        D = dwt_lo_matrix(lens[-1], dec_lo)
        A = D @ A
        lens.append(D.shape[0])
    for lvl in range(M, 0, -1):   # waverec with all-zero details
        d_len = lens[lvl]
        if A.shape[0] == d_len + 1:   # pywt.waverec length-mismatch trim
            A = A[:-1]
        assert A.shape[0] == d_len
        A = idwt_lo_matrix(d_len, rec_lo) @ A
    return A  # (L_out, L); L_out == L whenever L is even


def build_combined_operator(L):
    """Fused operator (l_pad, (NW+1)*SEG):
      * segment w (lanes [w*SEG, w*SEG+L)):  CENTERED reconstruction columns
        A_w^T[:, j] - m_w  (lanes >= L are exactly zero -> unmasked sums stay correct)
      * segment NW, lane w:  mean column m_w = A_w^T @ 1 / L  (mean computed by MXU)
    Also returns the per-wavelet uncentered (L, L) operators for the f64 reference."""
    assert L % 2 == 0, "operator construction assumes even L (square reconstruction)"
    l_pad = ((L + 63) // 64) * 64            # K-trim: 64-multiple is enough
    big = np.zeros((l_pad, (NW + 1) * SEG), dtype=np.float64)
    per_wavelet = []
    for w, (_, F, lo) in enumerate(WAVELETS):
        A = build_approx_operator(L, lo, F)
        assert A.shape == (L, L)
        At = A.T                              # row-vector convention: x @ At = rec
        m = At.mean(axis=1)                   # (L,): x @ m = mean(rec)
        big[:L, w * SEG: w * SEG + L] = At - m[:, None]   # centered columns
        big[:L, NW * SEG + w] = m                         # mean column, packed lane w
        per_wavelet.append(At)
    return big, per_wavelet


# ---------------------------------------------------------------------------
# Pallas kernel: single fused matmul (centered recs + means) + masked max/min,
# unmasked sum-of-squares, one lane-dense (8,128) store.
# ---------------------------------------------------------------------------
def _make_dwt_feat_kernel(bc_pad, l_true):
    inv_l = np.float32(1.0 / l_true)
    pad_lanes = SEG - NSTAT * NW

    def kernel(x_ref, op_ref, o_ref):
        x = x_ref[...]                                   # (bc_pad, l_pad)    full blocks
        op = op_ref[...]                                 # (l_pad, (NW+1)*SEG)
        # One MXU matmul: segments 0..NW-1 = centered reconstructions (padded lanes
        # exactly 0), segment NW lanes 0..NW-1 = per-wavelet means (already packed).
        r = jnp.dot(x, op, preferred_element_type=jnp.float32)   # (bc_pad, (NW+1)*SEG)
        mean = r[:, NW * SEG: NW * SEG + NW]             # (bc_pad, NW)  means from MXU

        col = lax.broadcasted_iota(jnp.int32, (bc_pad, SEG), 1)
        valid = col < l_true                             # one mask, reused per segment
        mx_cols, mn_cols, ss_cols = [], [], []
        for w in range(NW):                              # static unroll; lane-aligned slices
            s = r[:, w * SEG:(w + 1) * SEG]              # centered rec of wavelet w
            mx_cols.append(jnp.max(jnp.where(valid, s, -jnp.inf), axis=1, keepdims=True))
            mn_cols.append(jnp.min(jnp.where(valid, s, jnp.inf), axis=1, keepdims=True))
            ss_cols.append(jnp.sum(s * s, axis=1, keepdims=True))   # pads are 0: no mask
        mx = jnp.concatenate(mx_cols, axis=1) + mean     # max(rec) = max(centered) + mean
        mn = jnp.concatenate(mn_cols, axis=1) + mean
        std = jnp.sqrt(jnp.concatenate(ss_cols, axis=1) * inv_l)   # np.std -> ddof=0
        pad = jnp.zeros((bc_pad, pad_lanes), jnp.float32)
        # Stat-major slab: lanes [0:7]=max, [7:14]=min, [14:21]=mean, [21:28]=std.
        o_ref[...] = jnp.concatenate([mx, mn, mean, std, pad], axis=1)   # one dense store

    return kernel


def _dwt_feat_forward(x, y, big_op):
    """x: (B, L, C) float32, y: (B, L) (mask source, assumed all >= 0),
    big_op: (l_pad, (NW+1)*SEG) float32 fused operator.  Returns (B, C*NW*4)."""
    del y  # TODO(synk): ragged y<0 masking changes length and level count M per batch.
    B, L, C = x.shape
    assert L % 2 == 0, "kernel assumes even L (reconstruction length == L)"
    BC = B * C
    bc_pad = ((BC + 7) // 8) * 8                         # sublane multiple
    l_pad, width = big_op.shape
    assert width == (NW + 1) * SEG and l_pad >= L and l_pad % 8 == 0

    # rows = (batch, channel) signals, batch-major; pad rows to 8, K to l_pad.
    x2d = jnp.transpose(x, (0, 2, 1)).reshape(BC, L).astype(jnp.float32)
    x_pad = jnp.zeros((bc_pad, l_pad), jnp.float32).at[:BC, :L].set(x2d)

    # grid=() on purpose: ~262 KiB total VMEM, a grid only adds per-step overhead.
    # For large BC on v7x, switch to a row-parallel grid (block (256, l_pad), operator
    # index_map lambda i: (0, 0), dimension_semantics=("parallel",)) to use both TCs.
    out = pl.pallas_call(
        _make_dwt_feat_kernel(bc_pad, L),
        out_shape=jax.ShapeDtypeStruct((bc_pad, SEG), jnp.float32),
        in_specs=[pl.BlockSpec(memory_space=pltpu.MemorySpace.VMEM),
                  pl.BlockSpec(memory_space=pltpu.MemorySpace.VMEM)],
        out_specs=pl.BlockSpec(memory_space=pltpu.MemorySpace.VMEM),
    )(x_pad, big_op)

    # (bc_pad,128) -> rows [:BC], lanes [:28]=[stat][wavelet] -> [wavelet][stat].
    stats = out[:BC, :NSTAT * NW].reshape(BC, NSTAT, NW)
    feats = jnp.transpose(stats, (0, 2, 1)).reshape(B, C * NW * NSTAT)
    return feats


# Single jitted dispatch: pad/transpose, pallas_call and the output permutation fuse.
dwt_feat_forward = jax.jit(_dwt_feat_forward)


# ---------------------------------------------------------------------------
if __name__ == "__main__":
    B, L, C = 2, 60, 3  # n_feats=3 channels, even L so all reconstructions have length L
    key = jax.random.PRNGKey(0)
    kx, ky = jax.random.split(key)
    x = jax.random.normal(kx, (B, L, C), dtype=jnp.float32)
    y = jax.random.uniform(ky, (B, L), dtype=jnp.float32)  # all >= 0 -> full mask
    assert np.all(np.asarray(y) >= 0.0)

    big_np, ops_list = build_combined_operator(L)           # (64, 8*128), list of (L,L)
    big_op = jnp.asarray(big_np, dtype=jnp.float32)

    feats = jax.block_until_ready(dwt_feat_forward(x, y, big_op))
    assert feats.shape == (B, C * NW * 4)

    # sanity check against the same linear-operator math in float64 numpy
    x_np = np.asarray(x, dtype=np.float64)
    x2d_np = np.transpose(x_np, (0, 2, 1)).reshape(B * C, L)
    ref = np.zeros((B * C, NW, 4), dtype=np.float64)
    for w in range(NW):
        r = x2d_np @ ops_list[w]
        ref[:, w, 0] = r.max(axis=1)
        ref[:, w, 1] = r.min(axis=1)
        ref[:, w, 2] = r.mean(axis=1)
        ref[:, w, 3] = r.std(axis=1)
    ref = ref.reshape(B, -1)
    np.testing.assert_allclose(np.asarray(feats), ref, rtol=2e-3, atol=2e-3)

    print("KERNEL_OK")
</pallas_src>

<mosaic_0001>
module attributes {stable_mosaic.version = 11 : i64} {
  func.func @kernel(%arg0: memref<8x64xf32, #tpu.memory_space<vmem>>, %arg1: memref<64x1024xf32, #tpu.memory_space<vmem>>, %arg2: memref<8x128xf32, #tpu.memory_space<vmem>>) attributes {dimension_semantics = [], scalar_prefetch = 0 : i64, scratch_operands = 0 : i64, tpu.core_type = #tpu.core_type<tc>} {
    %c0 = arith.constant 0 : index
    %c0_0 = arith.constant 0 : index
    %0 = vector.load %arg0[%c0, %c0_0] : memref<8x64xf32, #tpu.memory_space<vmem>>, vector<8x64xf32>
    %c0_1 = arith.constant 0 : index
    %c0_2 = arith.constant 0 : index
    %1 = vector.load %arg1[%c0_1, %c0_2] : memref<64x1024xf32, #tpu.memory_space<vmem>>, vector<64x1024xf32>
    %cst = arith.constant dense<0.000000e+00> : vector<8x1024xf32>
    %2 = tpu.matmul %0, %1, %cst {dimension_numbers = #tpu.dot_dimension_numbers<[1], [0], [0], [1], [0, 0, 1, 1], [], []>} : vector<8x64xf32>, vector<64x1024xf32>, vector<8x1024xf32> -> vector<8x1024xf32>
    %3 = vector.extract_strided_slice %2 {offsets = [0, 896], sizes = [8, 7], strides = [1, 1]} : vector<8x1024xf32> to vector<8x7xf32>
    %4 = tpu.iota {dimensions = array<i32: 1>} : vector<8x128xi32>
    %c60_i32 = arith.constant 60 : i32
    %5 = vector.broadcast %c60_i32 : i32 to vector<8x128xi32>
    %6 = arith.cmpi slt, %4, %5 : vector<8x128xi32>
    %7 = vector.extract_strided_slice %2 {offsets = [0, 0], sizes = [8, 128], strides = [1, 1]} : vector<8x1024xf32> to vector<8x128xf32>
    %cst_3 = arith.constant 0xFF800000 : f32
    %8 = vector.broadcast %cst_3 : f32 to vector<8x128xf32>
    %9 = arith.select %6, %7, %8 : vector<8x128xi1>, vector<8x128xf32>
    %cst_4 = arith.constant dense<0xFF800000> : vector<8xf32>
    %10 = vector.multi_reduction <maximumf>, %9, %cst_4 [1] : vector<8x128xf32> to vector<8xf32>
    %11 = vector.shape_cast %10 : vector<8xf32> to vector<8x1xf32>
    %cst_5 = arith.constant 0x7F800000 : f32
    %12 = vector.broadcast %cst_5 : f32 to vector<8x128xf32>
    %13 = arith.select %6, %7, %12 : vector<8x128xi1>, vector<8x128xf32>
    %cst_6 = arith.constant dense<0x7F800000> : vector<8xf32>
    %14 = vector.multi_reduction <minimumf>, %13, %cst_6 [1] : vector<8x128xf32> to vector<8xf32>
    %15 = vector.shape_cast %14 : vector<8xf32> to vector<8x1xf32>
    %16 = arith.mulf %7, %7 : vector<8x128xf32>
    %cst_7 = arith.constant dense<0.000000e+00> : vector<8xf32>
    %17 = vector.multi_reduction <add>, %16, %cst_7 [1] : vector<8x128xf32> to vector<8xf32>
    %18 = vector.shape_cast %17 : vector<8xf32> to vector<8x1xf32>
    %19 = vector.extract_strided_slice %2 {offsets = [0, 128], sizes = [8, 128], strides = [1, 1]} : vector<8x1024xf32> to vector<8x128xf32>
    %cst_8 = arith.constant 0xFF800000 : f32
    %20 = vector.broadcast %cst_8 : f32 to vector<8x128xf32>
    %21 = arith.select %6, %19, %20 : vector<8x128xi1>, vector<8x128xf32>
    %cst_9 = arith.constant dense<0xFF800000> : vector<8xf32>
    %22 = vector.multi_reduction <maximumf>, %21, %cst_9 [1] : vector<8x128xf32> to vector<8xf32>
    %23 = vector.shape_cast %22 : vector<8xf32> to vector<8x1xf32>
    %cst_10 = arith.constant 0x7F800000 : f32
    %24 = vector.broadcast %cst_10 : f32 to vector<8x128xf32>
    %25 = arith.select %6, %19, %24 : vector<8x128xi1>, vector<8x128xf32>
    %cst_11 = arith.constant dense<0x7F800000> : vector<8xf32>
    %26 = vector.multi_reduction <minimumf>, %25, %cst_11 [1] : vector<8x128xf32> to vector<8xf32>
    %27 = vector.shape_cast %26 : vector<8xf32> to vector<8x1xf32>
    %28 = arith.mulf %19, %19 : vector<8x128xf32>
    %cst_12 = arith.constant dense<0.000000e+00> : vector<8xf32>
    %29 = vector.multi_reduction <add>, %28, %cst_12 [1] : vector<8x128xf32> to vector<8xf32>
    %30 = vector.shape_cast %29 : vector<8xf32> to vector<8x1xf32>
    %31 = vector.extract_strided_slice %2 {offsets = [0, 256], sizes = [8, 128], strides = [1, 1]} : vector<8x1024xf32> to vector<8x128xf32>
    %cst_13 = arith.constant 0xFF800000 : f32
    %32 = vector.broadcast %cst_13 : f32 to vector<8x128xf32>
    %33 = arith.select %6, %31, %32 : vector<8x128xi1>, vector<8x128xf32>
    %cst_14 = arith.constant dense<0xFF800000> : vector<8xf32>
    %34 = vector.multi_reduction <maximumf>, %33, %cst_14 [1] : vector<8x128xf32> to vector<8xf32>
    %35 = vector.shape_cast %34 : vector<8xf32> to vector<8x1xf32>
    %cst_15 = arith.constant 0x7F800000 : f32
    %36 = vector.broadcast %cst_15 : f32 to vector<8x128xf32>
    %37 = arith.select %6, %31, %36 : vector<8x128xi1>, vector<8x128xf32>
    %cst_16 = arith.constant dense<0x7F800000> : vector<8xf32>
    %38 = vector.multi_reduction <minimumf>, %37, %cst_16 [1] : vector<8x128xf32> to vector<8xf32>
    %39 = vector.shape_cast %38 : vector<8xf32> to vector<8x1xf32>
    %40 = arith.mulf %31, %31 : vector<8x128xf32>
    %cst_17 = arith.constant dense<0.000000e+00> : vector<8xf32>
    %41 = vector.multi_reduction <add>, %40, %cst_17 [1] : vector<8x128xf32> to vector<8xf32>
    %42 = vector.shape_cast %41 : vector<8xf32> to vector<8x1xf32>
    %43 = vector.extract_strided_slice %2 {offsets = [0, 384], sizes = [8, 128], strides = [1, 1]} : vector<8x1024xf32> to vector<8x128xf32>
    %cst_18 = arith.constant 0xFF800000 : f32
    %44 = vector.broadcast %cst_18 : f32 to vector<8x128xf32>
    %45 = arith.select %6, %43, %44 : vector<8x128xi1>, vector<8x128xf32>
    %cst_19 = arith.constant dense<0xFF800000> : vector<8xf32>
    %46 = vector.multi_reduction <maximumf>, %45, %cst_19 [1] : vector<8x128xf32> to vector<8xf32>
    %47 = vector.shape_cast %46 : vector<8xf32> to vector<8x1xf32>
    %cst_20 = arith.constant 0x7F800000 : f32
    %48 = vector.broadcast %cst_20 : f32 to vector<8x128xf32>
    %49 = arith.select %6, %43, %48 : vector<8x128xi1>, vector<8x128xf32>
    %cst_21 = arith.constant dense<0x7F800000> : vector<8xf32>
    %50 = vector.multi_reduction <minimumf>, %49, %cst_21 [1] : vector<8x128xf32> to vector<8xf32>
    %51 = vector.shape_cast %50 : vector<8xf32> to vector<8x1xf32>
    %52 = arith.mulf %43, %43 : vector<8x128xf32>
    %cst_22 = arith.constant dense<0.000000e+00> : vector<8xf32>
    %53 = vector.multi_reduction <add>, %52, %cst_22 [1] : vector<8x128xf32> to vector<8xf32>
    %54 = vector.shape_cast %53 : vector<8xf32> to vector<8x1xf32>
    %55 = vector.extract_strided_slice %2 {offsets = [0, 512], sizes = [8, 128], strides = [1, 1]} : vector<8x1024xf32> to vector<8x128xf32>
    %cst_23 = arith.constant 0xFF800000 : f32
    %56 = vector.broadcast %cst_23 : f32 to vector<8x128xf32>
    %57 = arith.select %6, %55, %56 : vector<8x128xi1>, vector<8x128xf32>
    %cst_24 = arith.constant dense<0xFF800000> : vector<8xf32>
    %58 = vector.multi_reduction <maximumf>, %57, %cst_24 [1] : vector<8x128xf32> to vector<8xf32>
    %59 = vector.shape_cast %58 : vector<8xf32> to vector<8x1xf32>
    %cst_25 = arith.constant 0x7F800000 : f32
    %60 = vector.broadcast %cst_25 : f32 to vector<8x128xf32>
    %61 = arith.select %6, %55, %60 : vector<8x128xi1>, vector<8x128xf32>
    %cst_26 = arith.constant dense<0x7F800000> : vector<8xf32>
    %62 = vector.multi_reduction <minimumf>, %61, %cst_26 [1] : vector<8x128xf32> to vector<8xf32>
    %63 = vector.shape_cast %62 : vector<8xf32> to vector<8x1xf32>
    %64 = arith.mulf %55, %55 : vector<8x128xf32>
    %cst_27 = arith.constant dense<0.000000e+00> : vector<8xf32>
    %65 = vector.multi_reduction <add>, %64, %cst_27 [1] : vector<8x128xf32> to vector<8xf32>
    %66 = vector.shape_cast %65 : vector<8xf32> to vector<8x1xf32>
    %67 = vector.extract_strided_slice %2 {offsets = [0, 640], sizes = [8, 128], strides = [1, 1]} : vector<8x1024xf32> to vector<8x128xf32>
    %cst_28 = arith.constant 0xFF800000 : f32
    %68 = vector.broadcast %cst_28 : f32 to vector<8x128xf32>
    %69 = arith.select %6, %67, %68 : vector<8x128xi1>, vector<8x128xf32>
    %cst_29 = arith.constant dense<0xFF800000> : vector<8xf32>
    %70 = vector.multi_reduction <maximumf>, %69, %cst_29 [1] : vector<8x128xf32> to vector<8xf32>
    %71 = vector.shape_cast %70 : vector<8xf32> to vector<8x1xf32>
    %cst_30 = arith.constant 0x7F800000 : f32
    %72 = vector.broadcast %cst_30 : f32 to vector<8x128xf32>
    %73 = arith.select %6, %67, %72 : vector<8x128xi1>, vector<8x128xf32>
    %cst_31 = arith.constant dense<0x7F800000> : vector<8xf32>
    %74 = vector.multi_reduction <minimumf>, %73, %cst_31 [1] : vector<8x128xf32> to vector<8xf32>
    %75 = vector.shape_cast %74 : vector<8xf32> to vector<8x1xf32>
    %76 = arith.mulf %67, %67 : vector<8x128xf32>
    %cst_32 = arith.constant dense<0.000000e+00> : vector<8xf32>
    %77 = vector.multi_reduction <add>, %76, %cst_32 [1] : vector<8x128xf32> to vector<8xf32>
    %78 = vector.shape_cast %77 : vector<8xf32> to vector<8x1xf32>
    %79 = vector.extract_strided_slice %2 {offsets = [0, 768], sizes = [8, 128], strides = [1, 1]} : vector<8x1024xf32> to vector<8x128xf32>
    %cst_33 = arith.constant 0xFF800000 : f32
    %80 = vector.broadcast %cst_33 : f32 to vector<8x128xf32>
    %81 = arith.select %6, %79, %80 : vector<8x128xi1>, vector<8x128xf32>
    %cst_34 = arith.constant dense<0xFF800000> : vector<8xf32>
    %82 = vector.multi_reduction <maximumf>, %81, %cst_34 [1] : vector<8x128xf32> to vector<8xf32>
    %83 = vector.shape_cast %82 : vector<8xf32> to vector<8x1xf32>
    %cst_35 = arith.constant 0x7F800000 : f32
    %84 = vector.broadcast %cst_35 : f32 to vector<8x128xf32>
    %85 = arith.select %6, %79, %84 : vector<8x128xi1>, vector<8x128xf32>
    %cst_36 = arith.constant dense<0x7F800000> : vector<8xf32>
    %86 = vector.multi_reduction <minimumf>, %85, %cst_36 [1] : vector<8x128xf32> to vector<8xf32>
    %87 = vector.shape_cast %86 : vector<8xf32> to vector<8x1xf32>
    %88 = arith.mulf %79, %79 : vector<8x128xf32>
    %cst_37 = arith.constant dense<0.000000e+00> : vector<8xf32>
    %89 = vector.multi_reduction <add>, %88, %cst_37 [1] : vector<8x128xf32> to vector<8xf32>
    %90 = vector.shape_cast %89 : vector<8xf32> to vector<8x1xf32>
    %91 = tpu.concatenate %11, %23, %35, %47, %59, %71, %83 in 1 : vector<8x1xf32>, vector<8x1xf32>, vector<8x1xf32>, vector<8x1xf32>, vector<8x1xf32>, vector<8x1xf32>, vector<8x1xf32> -> vector<8x7xf32>
    %92 = arith.addf %91, %3 : vector<8x7xf32>
    %93 = tpu.concatenate %15, %27, %39, %51, %63, %75, %87 in 1 : vector<8x1xf32>, vector<8x1xf32>, vector<8x1xf32>, vector<8x1xf32>, vector<8x1xf32>, vector<8x1xf32>, vector<8x1xf32> -> vector<8x7xf32>
    %94 = arith.addf %93, %3 : vector<8x7xf32>
    %95 = tpu.concatenate %18, %30, %42, %54, %66, %78, %90 in 1 : vector<8x1xf32>, vector<8x1xf32>, vector<8x1xf32>, vector<8x1xf32>, vector<8x1xf32>, vector<8x1xf32>, vector<8x1xf32> -> vector<8x7xf32>
    %cst_38 = arith.constant 0.0166666675 : f32
    %96 = vector.broadcast %cst_38 : f32 to vector<8x7xf32>
    %97 = arith.mulf %95, %96 : vector<8x7xf32>
    %98 = math.sqrt %97 : vector<8x7xf32>
    %cst_39 = arith.constant 0.000000e+00 : f32
    %99 = vector.broadcast %cst_39 : f32 to vector<8x100xf32>
    %100 = tpu.concatenate %92, %94, %3, %98, %99 in 1 : vector<8x7xf32>, vector<8x7xf32>, vector<8x7xf32>, vector<8x7xf32>, vector<8x100xf32> -> vector<8x128xf32>
    %c0_40 = arith.constant 0 : index
    %c0_41 = arith.constant 0 : index
    %101 = vector.load %arg2[%c0_40, %c0_41] : memref<8x128xf32, #tpu.memory_space<vmem>>, vector<8x128xf32>
    tpu.vector_store %arg2[%c0_40, %c0_41], %100 {strides = array<i32>} : memref<8x128xf32, #tpu.memory_space<vmem>>, vector<8x128xf32>,
    return
  }
}

</mosaic_0001>

<bundles_post_ra>
// kernel: _dwt_feat_forward.1
= control target key start
LH: loop header
LB: loop body
LE: loop exit
PB: predicated region body
PF: predicated region fallthrough
CT: control target
= control target key end

     0   :  { %7 = vsyncpa [#allocation3], 0  ;;  %s539_s9 = smov [#allocation2]   ;;  %s621_s0 = inlined_call_operand.vmem [shape: f32[8,64], index: 0, kind: input, shape index: {}]   ;;  %s622_s1 = inlined_call_operand.hbm [shape: f32[64,1024], index: 1, kind: input, shape index: {}]   ;;  %s623_s2 = inlined_call_operand.vmem [shape: f32[8,128], index: 2, kind: output, shape index: {}]  }
   0x1   :  { %s15_s10 = sshll.u32 %s539_s9, 4  ;;  %s16_s10 = int_to_ptr.vmem [resolvable:$true] %s15_s10 }
   0x2   :  { %s525_s11 = scalar_lea.vmem %s16_s10, 8192  ;;  %p530_p1 = scmp.lt.s32.totalorder %s16_s10, %s16_s10 }
   0x3   :  { %p526_p0 = scmp.ne.s32.totalorder %s16_s10, %s525_s11  ;;  %p531_p2 = scmp.lt.s32.totalorder %s525_s11, %s525_s11 }
   0x5   :  { %p532_p3 = por %p531_p2, %p530_p1 }
   0x7   :  { %p533_p4 = pnand %p532_p3, %p526_p0 }
   0x9   :  { %536 = shalt.err (!%p533_p4)
}
   0xa   :  { %s540_s12 = smov 1024   ;;  %s541_s13 = smov 64  }
   0xb   :  { %21 = dma.hbm_to_vmem [thread:$0]  %s622_s1, 8192, %s16_s10, [#allocation3], %s540_s12, %s540_s12, %s541_s13  }
   0xc   :  { %537 = dma.done.wait [#allocation3], 8192  }
   0xd   :  { %538 = vsyncadd [#allocation3], 4294959104  ;;  %v542_v0 = vmov 0.0   ;;  %v83_v1 = vld [vmem:[#allocation2 + $0x1c8] sm:$0xff]  ;;  %v82_v2 = vld [vmem:[#allocation2 + $0x1c0] sm:$0xff]  ;;  %vm90_vm0 = vcmask 523264  }
   0xe   :  { %158 = vmatprep.mubr.f32.mxu0 %v542_v0  ;;  %229 = vmatprep.mubr.f32.mxu1 %v542_v0  ;;  %v85_v3 = vld [vmem:[#allocation2 + $0x1d8] sm:$0xff]  ;;  %v75_v4 = vld [vmem:[#allocation2 + $0x188] sm:$0xff]  ;;  %v84_v5 = vld [vmem:[#allocation2 + $0x1d0] sm:$0xff]  ;;  %vm444_vm2 = vcmask 7168   ;;  %vm446_vm3 = vcmask 15360   ;;  %vm448_vm4 = vcmask 23552  }
   0xf   :  { %110 = vmatprep.subr.mxu0 %v83_v1  ;;  %181 = vmatprep.subr.mxu1 %v85_v3  ;;  %v74_v6 = vld [vmem:[#allocation2 + $0x180] sm:$0xff]  ;;  %v77_v7 = vld [vmem:[#allocation2 + $0x198] sm:$0xff]  ;;  %v67_v8 = vld [vmem:[#allocation2 + $0x148] sm:$0xff]  ;;  %vm450_vm5 = vcmask 31744   ;;  %vm452_vm6 = vcmask 39936   ;;  %vm454_vm7 = vcmask 48128  }
  0x10   :  { %111 = vmatpush1.msra.mxu0 %v82_v2  ;;  %182 = vmatpush1.msra.mxu1 %v84_v5  ;;  %v76_v9 = vld [vmem:[#allocation2 + $0x190] sm:$0xff]  ;;  %v66_v10 = vld [vmem:[#allocation2 + $0x140] sm:$0xff]  ;;  %v69_v11 = vld [vmem:[#allocation2 + $0x158] sm:$0xff]  ;;  %s544_s17 = smov 7   ;;  %s545_s18 = smov 21   ;;  %vm490_vm10 = vcmask 56320  }
  0x11   :  { %112 = vmatprep.subr.mxu0 %v75_v4  ;;  %183 = vmatprep.subr.mxu1 %v77_v7  ;;  %v59_v12 = vld [vmem:[#allocation2 + $0x108] sm:$0xff]  ;;  %v68_v13 = vld [vmem:[#allocation2 + $0x150] sm:$0xff]  ;;  %v61_v14 = vld [vmem:[#allocation2 + $0x118] sm:$0xff]  ;;  %vm492_vm11 = vcmask 113664   ;;  %vm494_vm12 = vcmask 171008   ;;  %vm496_vm13 = vcmask 228352  }
  0x12   :  { %113 = vmatpush1.msra.mxu0 %v74_v6  ;;  %184 = vmatpush1.msra.mxu1 %v76_v9  ;;  %v58_v15 = vld [vmem:[#allocation2 + $0x100] sm:$0xff]  ;;  %v60_v16 = vld [vmem:[#allocation2 + $0x110] sm:$0xff]  ;;  %v51_v17 = vld [vmem:[#allocation2 + $0xc8] sm:$0xff] }
  0x13   :  { %114 = vmatprep.subr.mxu0 %v67_v8  ;;  %185 = vmatprep.subr.mxu1 %v69_v11  ;;  %v53_v18 = vld [vmem:[#allocation2 + $0xd8] sm:$0xff]  ;;  %v50_v19 = vld [vmem:[#allocation2 + $0xc0] sm:$0xff]  ;;  %v52_v20 = vld [vmem:[#allocation2 + $0xd0] sm:$0xff]  ;;  %v378_v11 = vlaneseq }
  0x14   :  { %115 = vmatpush1.msra.mxu0 %v66_v10  ;;  %186 = vmatpush1.msra.mxu1 %v68_v13  ;;  %v43_v21 = vld [vmem:[#allocation2 + $0x88] sm:$0xff]  ;;  %v45_v22 = vld [vmem:[#allocation2 + $0x98] sm:$0xff]  ;;  %v42_v23 = vld [vmem:[#allocation2 + $0x80] sm:$0xff] }
  0x15   :  { %116 = vmatprep.subr.mxu0 %v59_v12  ;;  %187 = vmatprep.subr.mxu1 %v61_v14  ;;  %v44_v24 = vld [vmem:[#allocation2 + $0x90] sm:$0xff]  ;;  %v35_v25 = vld [vmem:[#allocation2 + $0x48] sm:$0xff]  ;;  %v37_v26 = vld [vmem:[#allocation2 + $0x58] sm:$0xff] }
  0x16   :  { %117 = vmatpush1.msra.mxu0 %v58_v15  ;;  %188 = vmatpush1.msra.mxu1 %v60_v16  ;;  %v34_v27 = vld [vmem:[#allocation2 + $0x40] sm:$0xff]  ;;  %v36_v28 = vld [vmem:[#allocation2 + $0x50] sm:$0xff]  ;;  %v27_v29 = vld [vmem:[#allocation2 + $0x8] sm:$0xff] }
  0x17   :  { %118 = vmatprep.subr.mxu0 %v51_v17  ;;  %189 = vmatprep.subr.mxu1 %v53_v18  ;;  %v29_v30 = vld [vmem:[#allocation2 + $0x18] sm:$0xff]  ;;  %v26_v31 = vld [vmem:[#allocation2] sm:$0xff]  ;;  %v28_v32 = vld [vmem:[#allocation2 + $0x10] sm:$0xff] }
  0x18   :  { %119 = vmatpush1.msra.mxu0 %v50_v19  ;;  %190 = vmatpush1.msra.mxu1 %v52_v20  ;;  %v569_v33 = vld [vmem:[%s621_s0] sm:$0xff]  ;;  %v87_v34 = vld [vmem:[#allocation2 + $0x1e8] sm:$0xff]  ;;  %v89_v37 = vld [vmem:[#allocation2 + $0x1f8] sm:$0xff]  ;;  %s543_s0 = smov 14  }
  0x19   :  { %120 = vmatprep.subr.mxu0 %v43_v21  ;;  %191 = vmatprep.subr.mxu1 %v45_v22  ;;  %v86_v35 = vld [vmem:[#allocation2 + $0x1e0] sm:$0xff]  ;;  %v79_v36 = vld [vmem:[#allocation2 + $0x1a8] sm:$0xff]  ;;  %v88_v39 = vld [vmem:[#allocation2 + $0x1f0] sm:$0xff] }
  0x1a   :  { %121 = vmatpush1.msra.mxu0 %v42_v23  ;;  %192 = vmatpush1.msra.mxu1 %v44_v24  ;;  %v78_v38 = vld [vmem:[#allocation2 + $0x1a0] sm:$0xff]  ;;  %v71_v40 = vld [vmem:[#allocation2 + $0x168] sm:$0xff]  ;;  %v81_v41 = vld [vmem:[#allocation2 + $0x1b8] sm:$0xff] }
  0x1b   :  { %122 = vmatprep.subr.mxu0 %v35_v25  ;;  %193 = vmatprep.subr.mxu1 %v37_v26  ;;  %v70_v42 = vld [vmem:[#allocation2 + $0x160] sm:$0xff]  ;;  %v80_v43 = vld [vmem:[#allocation2 + $0x1b0] sm:$0xff]  ;;  %v63_v44 = vld [vmem:[#allocation2 + $0x128] sm:$0xff] }
  0x1c   :  { %123 = vmatpush1.msra.mxu0 %v34_v27  ;;  %194 = vmatpush1.msra.mxu1 %v36_v28  ;;  %v73_v45 = vld [vmem:[#allocation2 + $0x178] sm:$0xff]  ;;  %v62_v46 = vld [vmem:[#allocation2 + $0x120] sm:$0xff]  ;;  %v72_v47 = vld [vmem:[#allocation2 + $0x170] sm:$0xff] }
  0x1d   :  { %124 = vmatprep.subr.mxu0 %v27_v29  ;;  %195 = vmatprep.subr.mxu1 %v29_v30  ;;  %v55_v48 = vld [vmem:[#allocation2 + $0xe8] sm:$0xff]  ;;  %v65_v49 = vld [vmem:[#allocation2 + $0x138] sm:$0xff]  ;;  %v54_v50 = vld [vmem:[#allocation2 + $0xe0] sm:$0xff] }
  0x1e   :  { %125 = vmatpush1.msra.mxu0 %v26_v31  ;;  %196 = vmatpush1.msra.mxu1 %v28_v32  ;;  %v64_v51 = vld [vmem:[#allocation2 + $0x130] sm:$0xff]  ;;  %v47_v52 = vld [vmem:[#allocation2 + $0xa8] sm:$0xff]  ;;  %v57_v53 = vld [vmem:[#allocation2 + $0xf8] sm:$0xff] }
  0x1f   :  { %504 = vmatmul.mubr.msk.f32.vlgmr.msra.gmra.mxu0 %vm90_vm0, %v569_v33  ;;  %252 = vmatprep.subr.mxu0 %v87_v34  ;;  %v46_v54 = vld [vmem:[#allocation2 + $0xa0] sm:$0xff]  ;;  %v56_v55 = vld [vmem:[#allocation2 + $0xf0] sm:$0xff]  ;;  %v39_v56 = vld [vmem:[#allocation2 + $0x68] sm:$0xff] }
  0x20   :  { %505 = vmatmul.mubr.msk.f32.vlgmr.msra.gmra.mxu1 %vm90_vm0, %v569_v33  ;;  %253 = vmatpush1.msra.mxu0 %v86_v35  ;;  %v49_v57 = vld [vmem:[#allocation2 + $0xb8] sm:$0xff]  ;;  %v38_v58 = vld [vmem:[#allocation2 + $0x60] sm:$0xff]  ;;  %v48_v59 = vld [vmem:[#allocation2 + $0xb0] sm:$0xff] }
  0x21   :  { %254 = vmatprep.subr.mxu0 %v79_v36  ;;  %323 = vmatprep.subr.mxu1 %v89_v37  ;;  %v31_v60 = vld [vmem:[#allocation2 + $0x28] sm:$0xff]  ;;  %v41_v61 = vld [vmem:[#allocation2 + $0x78] sm:$0xff]  ;;  %v30_v62 = vld [vmem:[#allocation2 + $0x20] sm:$0xff] }
  0x22   :  { %255 = vmatpush1.msra.mxu0 %v78_v38  ;;  %324 = vmatpush1.msra.mxu1 %v88_v39  ;;  %v40_v63 = vld [vmem:[#allocation2 + $0x70] sm:$0xff]  ;;  %v33_v1 = vld [vmem:[#allocation2 + $0x38] sm:$0xff] }
  0x23   :  { %256 = vmatprep.subr.mxu0 %v71_v40  ;;  %325 = vmatprep.subr.mxu1 %v81_v41  ;;  %v32_v2 = vld [vmem:[#allocation2 + $0x30] sm:$0xff] }
  0x24   :  { %257 = vmatpush1.msra.mxu0 %v70_v42  ;;  %326 = vmatpush1.msra.mxu1 %v80_v43 }
  0x25   :  { %258 = vmatprep.subr.mxu0 %v63_v44  ;;  %327 = vmatprep.subr.mxu1 %v73_v45 }
  0x26   :  { %259 = vmatpush1.msra.mxu0 %v62_v46  ;;  %328 = vmatpush1.msra.mxu1 %v72_v47 }
  0x27   :  { %260 = vmatprep.subr.mxu0 %v55_v48  ;;  %329 = vmatprep.subr.mxu1 %v65_v49 }
  0x28   :  { %261 = vmatpush1.msra.mxu0 %v54_v50  ;;  %330 = vmatpush1.msra.mxu1 %v64_v51 }
  0x29   :  { %262 = vmatprep.subr.mxu0 %v47_v52  ;;  %331 = vmatprep.subr.mxu1 %v57_v53 }
  0x2a   :  { %263 = vmatpush1.msra.mxu0 %v46_v54  ;;  %332 = vmatpush1.msra.mxu1 %v56_v55 }
  0x2b   :  { %264 = vmatprep.subr.mxu0 %v39_v56  ;;  %333 = vmatprep.subr.mxu1 %v49_v57 }
  0x2c   :  { %265 = vmatpush1.msra.mxu0 %v38_v58  ;;  %334 = vmatpush1.msra.mxu1 %v48_v59 }
  0x2d   :  { %266 = vmatprep.subr.mxu0 %v31_v60  ;;  %335 = vmatprep.subr.mxu1 %v41_v61 }
  0x2e   :  { %267 = vmatpush1.msra.mxu0 %v30_v62  ;;  %300 = vmatprep.mubr.f32.mxu0 %v542_v0 }
  0x2f   :  { %336 = vmatpush1.msra.mxu1 %v40_v63  ;;  %506 = vmatmul.mubr.msk.f32.vlgmr.msra.gmra.mxu0 %vm90_vm0, %v569_v33 }
  0x30   :  { %337 = vmatprep.subr.mxu1 %v33_v1  ;;  %371 = vmatprep.mubr.f32.mxu1 %v542_v0  ;;  %v379_v0 = vand.u32 127, %v378_v11 }
  0x31   :  { %338 = vmatpush1.msra.mxu1 %v32_v2 }
  0x32   :  { %507 = vmatmul.mubr.msk.f32.vlgmr.msra.gmra.mxu1 %vm90_vm0, %v569_v33  ;;  %vm380_vm1 = vcmp.lt.s32.totalorder %v379_v0, 60 }
  0xdf   :  { %v160_v3 = vpop.f32.mrf.mxu0 }
  0xe0   :  { %v231_v4 = vpop.f32.mrf.mxu1  ;;  %v387_v5 = vmul.f32 %v160_v3, %v160_v3  ;;  %v384_v18 = vsel %vm380_vm1, %v160_v3, inf  ;;  %v381_v25 = vsel %vm380_vm1, %v160_v3, -inf }
  0xe1   :  { %v162_v6 = vpop.f32.mrf.mxu0  ;;  %v405_v7 = vmul.f32 %v231_v4, %v231_v4  ;;  %v402_v20 = vsel %vm380_vm1, %v231_v4, inf  ;;  %v399_v27 = vsel %vm380_vm1, %v231_v4, -inf }
  0xe2   :  { %388 = vadd.xlane.f32.xlu0 %v387_v5  ;;  %v233_v8 = vpop.f32.mrf.mxu1  ;;  %v396_v10 = vmul.f32 %v162_v6, %v162_v6  ;;  %v393_v19 = vsel %vm380_vm1, %v162_v6, inf  ;;  %v390_v26 = vsel %vm380_vm1, %v162_v6, -inf }
  0xe3   :  { %406 = vadd.xlane.f32.xlu1 %v405_v7  ;;  %v414_v9 = vmul.f32 %v233_v8, %v233_v8  ;;  %v411_v21 = vsel %vm380_vm1, %v233_v8, inf  ;;  %v408_v28 = vsel %vm380_vm1, %v233_v8, -inf }
  0xe6   :  { %397 = vadd.xlane.f32.xlu0 %v396_v10 }
  0xe7   :  { %415 = vadd.xlane.f32.xlu1 %v414_v9 }
  0xef   :  { %v302_v12 = vpop.f32.mrf.mxu0 }
  0xf0   :  { %v423_v13 = vmul.f32 %v302_v12, %v302_v12  ;;  %v420_v22 = vsel %vm380_vm1, %v302_v12, inf  ;;  %v417_v29 = vsel %vm380_vm1, %v302_v12, -inf }
  0xf1   :  { %v304_v14 = vpop.f32.mrf.mxu0 }
  0xf2   :  { %v373_v15 = vpop.f32.mrf.mxu1  ;;  %424 = vadd.xlane.f32.xlu0 %v423_v13  ;;  %v432_v16 = vmul.f32 %v304_v14, %v304_v14  ;;  %v429_v23 = vsel %vm380_vm1, %v304_v14, inf  ;;  %v426_v30 = vsel %vm380_vm1, %v304_v14, -inf }
  0xf3   :  { %v441_v17 = vmul.f32 %v373_v15, %v373_v15  ;;  %v438_v24 = vsel %vm380_vm1, %v373_v15, inf  ;;  %v435_v31 = vsel %vm380_vm1, %v373_v15, -inf }
  0xf4   :  { %433 = vadd.xlane.f32.xlu1 %v432_v16  ;;  %v595_v32 = vpop.f32.mrf.mxu1 }
  0xf6   :  { %442 = vadd.xlane.f32.xlu0 %v441_v17 }
  0xf8   :  { %385 = vmin.xlane.f32.xlu1 %v384_v18 }
  0xfa   :  { %394 = vmin.xlane.f32.xlu0 %v393_v19 }
  0xfc   :  { %403 = vmin.xlane.f32.xlu1 %v402_v20 }
  0xfe   :  { %412 = vmin.xlane.f32.xlu0 %v411_v21 }
 0x100   :  { %421 = vmin.xlane.f32.xlu1 %v420_v22 }
 0x102   :  { %430 = vmin.xlane.f32.xlu0 %v429_v23 }
 0x104   :  { %439 = vmin.xlane.f32.xlu1 %v438_v24 }
 0x106   :  { %382 = vmax.xlane.f32.xlu0 %v381_v25 }
 0x108   :  { %391 = vmax.xlane.f32.xlu1 %v390_v26 }
 0x10a   :  { %400 = vmax.xlane.f32.xlu0 %v399_v27 }
 0x10c   :  { %409 = vmax.xlane.f32.xlu1 %v408_v28 }
 0x10e   :  { %418 = vmax.xlane.f32.xlu0 %v417_v29 }
 0x110   :  { %427 = vmax.xlane.f32.xlu1 %v426_v30 }
 0x112   :  { %436 = vmax.xlane.f32.xlu0 %v435_v31 }
 0x128   :  { %483 = vrot.lane.b32.xlu0 %v595_v32, %s543_s0 }
 0x16b   :  { %v389_v33 = vpop.xlane.xlu0 %388 }
 0x16c   :  { %v407_v34 = vpop.xlane.xlu1 %406 }
 0x16f   :  { %v398_v35 = vpop.xlane.xlu0 %397 }
 0x170   :  { %v464_v36 = vsel %vm444_vm2, %v389_v33, %v398_v35  ;;  %v416_v37 = vpop.xlane.xlu1 %415 }
 0x171   :  { %v465_v38 = vsel %vm446_vm3, %v464_v36, %v407_v34 }
 0x172   :  { %v466_v39 = vsel %vm448_vm4, %v465_v38, %v416_v37 }
 0x17b   :  { %v425_v40 = vpop.xlane.xlu0 %424 }
 0x17c   :  { %v467_v41 = vsel %vm450_vm5, %v466_v39, %v425_v40 }
 0x17d   :  { %v434_v42 = vpop.xlane.xlu1 %433 }
 0x17e   :  { %v468_v43 = vsel %vm452_vm6, %v467_v41, %v434_v42 }
 0x17f   :  { %v443_v44 = vpop.xlane.xlu0 %442 }
 0x180   :  { %v469_v45 = vsel %vm454_vm7, %v468_v43, %v443_v44 }
 0x181   :  { %v470_v46 = vmul.f32 0.016666668, %v469_v45  ;;  %v386_v47 = vpop.xlane.xlu1 %385 }
 0x183   :  { %515 = vrsqrt.f32 %v470_v46  ;;  %v395_v48 = vpop.xlane.xlu0 %394  ;;  %vm473_vm8 = vcmp.eq.f32.partialorder %v470_v46, inf  ;;  %v476_v3 = vand.u32 2147483648, %v470_v46  ;;  %vm475_vm9 = vcmp.eq.f32.partialorder %v470_v46, 0.0 }
 0x184   :  { %v457_v49 = vsel %vm444_vm2, %v386_v47, %v395_v48 }
 0x185   :  { %v404_v50 = vpop.xlane.xlu1 %403 }
 0x186   :  { %v458_v51 = vsel %vm446_vm3, %v457_v49, %v404_v50 }
 0x187   :  { %v413_v52 = vpop.xlane.xlu0 %412 }
 0x188   :  { %v459_v53 = vsel %vm448_vm4, %v458_v51, %v413_v52 }
 0x189   :  { %v422_v54 = vpop.xlane.xlu1 %421 }
 0x18a   :  { %v460_v55 = vsel %vm450_vm5, %v459_v53, %v422_v54 }
 0x18b   :  { %v431_v56 = vpop.xlane.xlu0 %430 }
 0x18c   :  { %v461_v57 = vsel %vm452_vm6, %v460_v55, %v431_v56 }
 0x18d   :  { %v440_v58 = vpop.xlane.xlu1 %439 }
 0x18e   :  { %v462_v59 = vsel %vm454_vm7, %v461_v57, %v440_v58 }
 0x18f   :  { %v463_v60 = vadd.f32 %v462_v59, %v595_v32  ;;  %v383_v61 = vpop.xlane.xlu0 %382 }
 0x190   :  { %v516_v62 = vpop.eup %515 }
 0x191   :  { %v392_v63 = vpop.xlane.xlu1 %391  ;;  %479 = vrot.lane.b32.xlu1 %v463_v60, %s544_s17  ;;  %v472_v1 = vmul.f32 %v516_v62, %v470_v46 }
 0x192   :  { %v445_v2 = vsel %vm444_vm2, %v383_v61, %v392_v63 }
 0x193   :  { %v401_v4 = vpop.xlane.xlu0 %400  ;;  %v474_v5 = vsel %vm473_vm8, %v470_v46, %v472_v1 }
 0x194   :  { %v447_v6 = vsel %vm446_vm3, %v445_v2, %v401_v4  ;;  %v477_v7 = vsel %vm475_vm9, %v476_v3, %v474_v5 }
 0x195   :  { %v410_v8 = vpop.xlane.xlu1 %409  ;;  %487 = vrot.lane.b32.xlu1 %v477_v7, %s545_s18 }
 0x196   :  { %v449_v9 = vsel %vm448_vm4, %v447_v6, %v410_v8 }
 0x197   :  { %v419_v10 = vpop.xlane.xlu0 %418 }
 0x198   :  { %v451_v11 = vsel %vm450_vm5, %v449_v9, %v419_v10 }
 0x199   :  { %v428_v12 = vpop.xlane.xlu1 %427 }
 0x19a   :  { %v453_v13 = vsel %vm452_vm6, %v451_v11, %v428_v12 }
 0x19b   :  { %v437_v0 = vpop.xlane.xlu0 %436 }
 0x19c   :  { %v455_v14 = vsel %vm454_vm7, %v453_v13, %v437_v0 }
 0x19d   :  { %v456_v15 = vadd.f32 %v455_v14, %v595_v32 }
 0x19f   :  { %v484_v18 = vpop.permute.xlu0 %483 }
 0x203   :  { %v480_v16 = vpop.permute.xlu1 %479 }
 0x204   :  { %v491_v17 = vsel %vm490_vm10, %v456_v15, %v480_v16 }
 0x205   :  { %v493_v19 = vsel %vm492_vm11, %v491_v17, %v484_v18 }
 0x207   :  { %v488_v20 = vpop.permute.xlu1 %487 }
 0x208   :  { %v495_v21 = vsel %vm494_vm12, %v493_v19, %v488_v20 }
 0x209   :  { %v497_v22 = vsel %vm496_vm13, %v495_v21, 0.0 }
 0x20a   :  { %498 = vst [vmem:[%s623_s2] sm:$0xff] %v497_v22 }
 0x20b   :  { %503 = vsyncpa [#allocation3], 1 }

</bundles_post_ra>
